<compile_context>
chip_gen: v7x
topology: tpu7x:2x2x1
jax: 0.10.0
libtpu: 0.0.40
codegen_flags: <defaults>
</compile_context>

<pallas_src>
import functools

import jax
import jax.numpy as jnp
from jax.experimental import pallas as pl
from jax.experimental.pallas import tpu as pltpu

# ---- model dimensions (small, consistent with the module) -------------------
B = 2                         # number of bags (batch)
N = 8                         # bag size (instances per bag)
NDIM = (32, 64, 32, 16)       # main_net: ind, hd1, hd2, hd3
DET_NDIM = (16,)              # detector hidden dims
TAU = 0.95                    # instance_dropout / gumbel-softmax temperature

IND, HD1, HD2, HD3 = NDIM
DET0 = DET_NDIM[0]
LANES = 128
TARGET_ROWS = 512             # rows (instances) per grid step for large batches

# ---- fused input slab lane layout -------------------------------------------
L_M = IND                     # lane holding the mask m
L_G = IND + 1                 # lane holding the gumbel noise

# ---- packed parameter slab layout (row offsets; everything 128-lane padded) --
R_W1 = 0 * LANES              # W1  (IND x HD1)  zero-padded to (128, 128)
R_W2 = 1 * LANES              # W2  (HD1 x HD2)  zero-padded to (128, 128)
R_W3 = 2 * LANES              # W3  (HD2 x HD3)  zero-padded to (128, 128)
R_WD1 = 3 * LANES             # Wd1 (HD3 x DET0) zero-padded to (128, 128)
R_TAIL = 4 * LANES            # 8 rows of bias / row vectors (zero padded):
#   +0: b1   +1: b2   +2: b3   +3: bd1   +4: Wd2^T   +5: We^T   +6: [bd2]   +7: [be]
P_ROWS = R_TAIL + 8
assert P_ROWS % 8 == 0


def _bag_attention_kernel(in_ref, p_ref, out_ref, *, bag_size, bags_per_tile):
    rows = bags_per_tile * bag_size

    xs = in_ref[...]                           # (rows, 128): x | m | g | 0-pad
    m = xs[:, L_M:L_M + 1]                     # (rows, 1)
    g = xs[:, L_G:L_G + 1]                     # (rows, 1)

    # ---- full-width (128-lane) parameter loads from the resident slab --------
    w1 = p_ref[R_W1:R_W1 + LANES, :]
    w2 = p_ref[R_W2:R_W2 + LANES, :]
    w3 = p_ref[R_W3:R_W3 + LANES, :]
    wd1 = p_ref[R_WD1:R_WD1 + LANES, :]
    b1 = p_ref[R_TAIL + 0:R_TAIL + 1, :]
    b2 = p_ref[R_TAIL + 1:R_TAIL + 2, :]
    b3 = p_ref[R_TAIL + 2:R_TAIL + 3, :]
    bd1 = p_ref[R_TAIL + 3:R_TAIL + 4, :]
    wd2_row = p_ref[R_TAIL + 4:R_TAIL + 5, :]
    we_row = p_ref[R_TAIL + 5:R_TAIL + 6, :]
    bd2 = p_ref[R_TAIL + 6:R_TAIL + 7, 0:1]
    be = p_ref[R_TAIL + 7:R_TAIL + 8, 0:1]

    # ---- main_net: 3x (Linear + ReLU) on the whole tile (MXU, 128-lane) ------
    # The m/g lanes of xs hit zero rows of the padded W1 -> contribute nothing;
    # padded output lanes stay exactly 0 through bias (0) and ReLU.
    h = jnp.maximum(jnp.dot(xs, w1, preferred_element_type=jnp.float32) + b1, 0.0)
    h = jnp.maximum(jnp.dot(h, w2, preferred_element_type=jnp.float32) + b2, 0.0)
    h = jnp.maximum(jnp.dot(h, w3, preferred_element_type=jnp.float32) + b3, 0.0)
    # h: (rows, 128), lanes >= HD3 are exactly 0

    # ---- detector: Linear+Sigmoid; width-1 head as VPU mul + lane reduce ------
    # Padded detector lanes give sigmoid(0)=0.5, annihilated by zero Wd2 lanes.
    d = jax.nn.sigmoid(jnp.dot(h, wd1, preferred_element_type=jnp.float32) + bd1)
    logit = jnp.sum(d * wd2_row, axis=-1, keepdims=True) + bd2        # (rows, 1)

    # ---- mask + gumbel noise + temperature (true divide, matches reference) ---
    z = (m * logit + g) / TAU                                         # (rows, 1)

    # ---- bag selector matrices built from 2-D iota (no relayouts/reshapes) ----
    r_s = jax.lax.broadcasted_iota(jnp.int32, (bags_per_tile, rows), 1)
    b_s = jax.lax.broadcasted_iota(jnp.int32, (bags_per_tile, rows), 0)
    sel = ((r_s >= b_s * bag_size) &
           (r_s < (b_s + 1) * bag_size)).astype(jnp.float32)          # (BT, rows)
    r_t = jax.lax.broadcasted_iota(jnp.int32, (rows, bags_per_tile), 0)
    b_t = jax.lax.broadcasted_iota(jnp.int32, (rows, bags_per_tile), 1)
    sel_t = ((r_t >= b_t * bag_size) &
             (r_t < (b_t + 1) * bag_size)).astype(jnp.float32)        # (rows, BT)

    # ---- batched per-bag softmax over instances -------------------------------
    # A per-tile constant is a valid stabilizer (constant within every bag), so
    # the softmax is mathematically identical to the reference's per-bag max.
    mx = jnp.max(z, axis=0, keepdims=True)                            # (1, 1)
    e = jnp.exp(z - mx)                                               # (rows, 1)
    den_bag = jnp.dot(sel, e, preferred_element_type=jnp.float32)     # (BT, 1)
    den_row = jnp.dot(sel_t, den_bag, preferred_element_type=jnp.float32)
    w_col = e / den_row                                               # (rows, 1)

    # ---- attention pooling + estimator for all bags at once (MXU) -------------
    pooled = jnp.dot(sel, w_col * h, preferred_element_type=jnp.float32)  # (BT, 128)
    y = jnp.sum(pooled * we_row, axis=-1, keepdims=True) + be         # (BT, 1)
    y_row = jnp.dot(sel_t, y, preferred_element_type=jnp.float32)     # (rows, 1)

    # ---- single lane-dense unmasked store: lane 0 = w, lane 1 = y -------------
    lane = jax.lax.broadcasted_iota(jnp.int32, (1, LANES), 1)
    out_ref[...] = (jnp.where(lane == 0, w_col, 0.0) +
                    jnp.where(lane == 1, y_row, 0.0))


def pack_params(params):
    """One-time host-side packing of all weights/biases into one 128-lane slab."""
    (w1, b1, w2, b2, w3, b3, wd1, bd1, wd2, bd2, we, be) = params
    p = jnp.zeros((P_ROWS, LANES), jnp.float32)
    p = p.at[R_W1:R_W1 + IND, 0:HD1].set(w1)
    p = p.at[R_W2:R_W2 + HD1, 0:HD2].set(w2)
    p = p.at[R_W3:R_W3 + HD2, 0:HD3].set(w3)
    p = p.at[R_WD1:R_WD1 + HD3, 0:DET0].set(wd1)
    p = p.at[R_TAIL + 0, 0:HD1].set(b1.reshape(-1))
    p = p.at[R_TAIL + 1, 0:HD2].set(b2.reshape(-1))
    p = p.at[R_TAIL + 2, 0:HD3].set(b3.reshape(-1))
    p = p.at[R_TAIL + 3, 0:DET0].set(bd1.reshape(-1))
    p = p.at[R_TAIL + 4, 0:DET0].set(wd2.reshape(-1))   # (DET0,1) -> row
    p = p.at[R_TAIL + 5, 0:HD3].set(we.reshape(-1))     # (HD3,1)  -> row
    p = p.at[R_TAIL + 6, 0].set(bd2.reshape(()))
    p = p.at[R_TAIL + 7, 0].set(be.reshape(()))
    return p


def _tiling(n_bags, bag_size, target_rows=TARGET_ROWS):
    """Whole bags per grid step; rows-per-step sublane aligned when multi-step."""
    bt = max(1, target_rows // bag_size)
    if bt >= n_bags:
        return n_bags, 1          # single step -> block shape == full array
    while (bt * bag_size) % 8:    # keep the (tile_rows, 128) blocks aligned
        bt += 1
    return bt, -(-n_bags // bt)


@jax.jit
def bag_attention_forward(x, m, gumbel, pslab):
    """x: (B, N, ind) f32, m: (B, N, 1) f32, gumbel: (B, 1, N) f32,
    pslab: packed parameter slab from pack_params().
    Returns (w, out) with w: (B, 1, N) and out: (B, 1), like the module."""
    n_bags, bag_size, ind = x.shape
    assert ind == IND
    bt, n_tiles = _tiling(n_bags, bag_size)
    rows = n_bags * bag_size
    rows_pad = bt * n_tiles * bag_size
    tile_rows = bt * bag_size

    # Fuse x / mask / gumbel into ONE 128-lane slab: x in lanes 0..IND-1,
    # mask in lane IND, gumbel noise in lane IND+1 (one DMA, unmasked loads).
    slab = jnp.zeros((rows_pad, LANES), jnp.float32)
    slab = slab.at[:rows, :IND].set(x.reshape(rows, IND))
    slab = slab.at[:rows, L_M].set(m.reshape(rows))
    slab = slab.at[:rows, L_G].set(gumbel.reshape(rows))

    kernel = functools.partial(_bag_attention_kernel,
                               bag_size=bag_size, bags_per_tile=bt)

    cost = pl.CostEstimate(
        flops=2 * rows * (IND * HD1 + HD1 * HD2 + HD2 * HD3 + HD3 * DET0
                          + 2 * HD3),
        transcendentals=rows * (DET0 + 1),
        bytes_accessed=2 * rows_pad * LANES * 4 + P_ROWS * LANES * 4)

    grid_spec = pltpu.PrefetchScalarGridSpec(
        num_scalar_prefetch=0,
        grid=(n_tiles,),
        in_specs=[
            pl.BlockSpec((tile_rows, LANES), lambda i: (i, 0)),   # fused input tile
            pl.BlockSpec((P_ROWS, LANES), lambda i: (0, 0)),      # params (resident)
        ],
        out_specs=pl.BlockSpec((tile_rows, LANES), lambda i: (i, 0)),
    )

    out_slab = pl.pallas_call(
        kernel,
        out_shape=jax.ShapeDtypeStruct((rows_pad, LANES), jnp.float32),
        grid_spec=grid_spec,
        compiler_params=pltpu.CompilerParams(
            dimension_semantics=("parallel",)),
        cost_estimate=cost,
    )(slab, pslab)

    # lane 0 = per-instance attention weight; lane 1 = bag prediction.
    w = out_slab[:rows, 0].reshape(n_bags, 1, bag_size)         # (B, 1, N)
    y = out_slab[:rows, 1].reshape(n_bags, bag_size)[:, 0:1]    # out.view(-1,1)
    return w, y


def _init_params(key):
    """Deterministic parameter init (PyTorch Linear-style uniform ranges)."""
    shapes = [
        (IND, HD1), (1, HD1),
        (HD1, HD2), (1, HD2),
        (HD2, HD3), (1, HD3),
        (HD3, DET0), (1, DET0),
        (DET0, 1), (1, 1),
        (HD3, 1), (1, 1),
    ]
    fan_ins = [IND, IND, HD1, HD1, HD2, HD2, HD3, HD3, DET0, DET0, HD3, HD3]
    keys = jax.random.split(key, len(shapes))
    params = []
    for k, shp, fi in zip(keys, shapes, fan_ins):
        bound = 1.0 / (fi ** 0.5)
        params.append(jax.random.uniform(k, shp, jnp.float32, -bound, bound))
    return tuple(params)


def _reference_forward(x, m, gumbel, params):
    """Pure-JAX reference for correctness check (mirrors the PyTorch forward)."""
    (w1, b1, w2, b2, w3, b3, wd1, bd1, wd2, bd2, we, be) = params
    h = jax.nn.relu(x @ w1 + b1)
    h = jax.nn.relu(h @ w2 + b2)
    h = jax.nn.relu(h @ w3 + b3)                              # (B, N, hd3)
    logit = jax.nn.sigmoid(h @ wd1 + bd1) @ wd2 + bd2         # (B, N, 1)
    x_det = jnp.swapaxes(m * logit, 2, 1)                     # (B, 1, N)
    w = jax.nn.softmax((x_det + gumbel) / TAU, axis=2)
    pooled = jnp.einsum('bqn,bnd->bqd', w, h)                 # (B, 1, hd3)
    out = (pooled @ we + be).reshape(-1, 1)
    return w, out


if __name__ == "__main__":
    key = jax.random.PRNGKey(0)
    k_x, k_p, k_g = jax.random.split(key, 3)

    x = jax.random.normal(k_x, (B, N, IND), jnp.float32)
    # mask: last 2 instances of bag 1 are padding
    m = jnp.ones((B, N, 1), jnp.float32).at[1, N - 2:, :].set(0.0)
    params = _init_params(k_p)
    # gumbel noise for gumbel_softmax (sampled once, shared by kernel and ref)
    # TODO(synk): torch samples this noise inside forward(); here it is drawn
    # in the wrapper with a fixed PRNGKey and fed to the kernel.
    gumbel = jax.random.gumbel(k_g, (B, 1, N), jnp.float32)

    pslab = pack_params(params)          # one-time parameter packing
    w_att, out = bag_attention_forward(x, m, gumbel, pslab)
    jax.block_until_ready((w_att, out))

    w_ref, out_ref = _reference_forward(x, m, gumbel, params)
    assert w_att.shape == (B, 1, N) and out.shape == (B, 1)
    assert jnp.allclose(w_att, w_ref, atol=1e-5, rtol=1e-5)
    assert jnp.allclose(out, out_ref, atol=1e-5, rtol=1e-5)

    print("KERNEL_OK")
</pallas_src>

<mosaic_0001>
module attributes {stable_mosaic.version = 11 : i64} {
  func.func @_bag_attention_kernel(%arg0: i32, %arg1: memref<16x128xf32, #tpu.memory_space<vmem>>, %arg2: memref<520x128xf32, #tpu.memory_space<vmem>>, %arg3: memref<16x128xf32, #tpu.memory_space<vmem>>) attributes {dimension_semantics = [#tpu.dimension_semantics<parallel>], iteration_bounds = array<i64: 1>, scalar_prefetch = 0 : i64, scratch_operands = 0 : i64, tpu.core_type = #tpu.core_type<tc>, window_params = [{transform_indices = @transform_0, window_bounds = array<i64: 16, 128>}, {pipeline_mode = #tpu.pipeline_mode<synchronous>, transform_indices = @transform_1, window_bounds = array<i64: 520, 128>}, {transform_indices = @transform_2, window_bounds = array<i64: 16, 128>}]} {
    %c0 = arith.constant 0 : index
    %c0_0 = arith.constant 0 : index
    %0 = vector.load %arg1[%c0, %c0_0] : memref<16x128xf32, #tpu.memory_space<vmem>>, vector<16x128xf32>
    %1 = vector.extract_strided_slice %0 {offsets = [0, 32], sizes = [16, 1], strides = [1, 1]} : vector<16x128xf32> to vector<16x1xf32>
    %2 = vector.extract_strided_slice %0 {offsets = [0, 33], sizes = [16, 1], strides = [1, 1]} : vector<16x128xf32> to vector<16x1xf32>
    %c0_1 = arith.constant 0 : index
    %c0_2 = arith.constant 0 : index
    %3 = vector.load %arg2[%c0_1, %c0_2] : memref<520x128xf32, #tpu.memory_space<vmem>>, vector<128x128xf32>
    %c128 = arith.constant 128 : index
    %c0_3 = arith.constant 0 : index
    %4 = vector.load %arg2[%c128, %c0_3] : memref<520x128xf32, #tpu.memory_space<vmem>>, vector<128x128xf32>
    %c256 = arith.constant 256 : index
    %c0_4 = arith.constant 0 : index
    %5 = vector.load %arg2[%c256, %c0_4] : memref<520x128xf32, #tpu.memory_space<vmem>>, vector<128x128xf32>
    %c384 = arith.constant 384 : index
    %c0_5 = arith.constant 0 : index
    %6 = vector.load %arg2[%c384, %c0_5] : memref<520x128xf32, #tpu.memory_space<vmem>>, vector<128x128xf32>
    %c512 = arith.constant 512 : index
    %c0_6 = arith.constant 0 : index
    %7 = vector.load %arg2[%c512, %c0_6] : memref<520x128xf32, #tpu.memory_space<vmem>>, vector<1x128xf32>
    %c513 = arith.constant 513 : index
    %c0_7 = arith.constant 0 : index
    %8 = vector.load %arg2[%c513, %c0_7] : memref<520x128xf32, #tpu.memory_space<vmem>>, vector<1x128xf32>
    %c514 = arith.constant 514 : index
    %c0_8 = arith.constant 0 : index
    %9 = vector.load %arg2[%c514, %c0_8] : memref<520x128xf32, #tpu.memory_space<vmem>>, vector<1x128xf32>
    %c515 = arith.constant 515 : index
    %c0_9 = arith.constant 0 : index
    %10 = vector.load %arg2[%c515, %c0_9] : memref<520x128xf32, #tpu.memory_space<vmem>>, vector<1x128xf32>
    %c516 = arith.constant 516 : index
    %c0_10 = arith.constant 0 : index
    %11 = vector.load %arg2[%c516, %c0_10] : memref<520x128xf32, #tpu.memory_space<vmem>>, vector<1x128xf32>
    %c517 = arith.constant 517 : index
    %c0_11 = arith.constant 0 : index
    %12 = vector.load %arg2[%c517, %c0_11] : memref<520x128xf32, #tpu.memory_space<vmem>>, vector<1x128xf32>
    %c518 = arith.constant 518 : index
    %c0_12 = arith.constant 0 : index
    %13 = vector.load %arg2[%c518, %c0_12] : memref<520x128xf32, #tpu.memory_space<vmem>>, vector<1x1xf32>
    %c519 = arith.constant 519 : index
    %c0_13 = arith.constant 0 : index
    %14 = vector.load %arg2[%c519, %c0_13] : memref<520x128xf32, #tpu.memory_space<vmem>>, vector<1x1xf32>
    %cst = arith.constant dense<0.000000e+00> : vector<16x128xf32>
    %15 = tpu.matmul %0, %3, %cst {dimension_numbers = #tpu.dot_dimension_numbers<[1], [0], [0], [1], [0, 0, 1, 1], [], []>} : vector<16x128xf32>, vector<128x128xf32>, vector<16x128xf32> -> vector<16x128xf32>
    %16 = vector.broadcast %7 : vector<1x128xf32> to vector<16x128xf32>
    %17 = arith.addf %15, %16 : vector<16x128xf32>
    %cst_14 = arith.constant 0.000000e+00 : f32
    %18 = vector.broadcast %cst_14 : f32 to vector<16x128xf32>
    %19 = arith.maximumf %17, %18 : vector<16x128xf32>
    %cst_15 = arith.constant dense<0.000000e+00> : vector<16x128xf32>
    %20 = tpu.matmul %19, %4, %cst_15 {dimension_numbers = #tpu.dot_dimension_numbers<[1], [0], [0], [1], [0, 0, 1, 1], [], []>} : vector<16x128xf32>, vector<128x128xf32>, vector<16x128xf32> -> vector<16x128xf32>
    %21 = vector.broadcast %8 : vector<1x128xf32> to vector<16x128xf32>
    %22 = arith.addf %20, %21 : vector<16x128xf32>
    %cst_16 = arith.constant 0.000000e+00 : f32
    %23 = vector.broadcast %cst_16 : f32 to vector<16x128xf32>
    %24 = arith.maximumf %22, %23 : vector<16x128xf32>
    %cst_17 = arith.constant dense<0.000000e+00> : vector<16x128xf32>
    %25 = tpu.matmul %24, %5, %cst_17 {dimension_numbers = #tpu.dot_dimension_numbers<[1], [0], [0], [1], [0, 0, 1, 1], [], []>} : vector<16x128xf32>, vector<128x128xf32>, vector<16x128xf32> -> vector<16x128xf32>
    %26 = vector.broadcast %9 : vector<1x128xf32> to vector<16x128xf32>
    %27 = arith.addf %25, %26 : vector<16x128xf32>
    %cst_18 = arith.constant 0.000000e+00 : f32
    %28 = vector.broadcast %cst_18 : f32 to vector<16x128xf32>
    %29 = arith.maximumf %27, %28 : vector<16x128xf32>
    %cst_19 = arith.constant dense<0.000000e+00> : vector<16x128xf32>
    %30 = tpu.matmul %29, %6, %cst_19 {dimension_numbers = #tpu.dot_dimension_numbers<[1], [0], [0], [1], [0, 0, 1, 1], [], []>} : vector<16x128xf32>, vector<128x128xf32>, vector<16x128xf32> -> vector<16x128xf32>
    %31 = vector.broadcast %10 : vector<1x128xf32> to vector<16x128xf32>
    %32 = arith.addf %30, %31 : vector<16x128xf32>
    %33 = arith.negf %32 : vector<16x128xf32>
    %34 = math.exp %33 : vector<16x128xf32>
    %cst_20 = arith.constant 1.000000e+00 : f32
    %35 = vector.broadcast %cst_20 : f32 to vector<16x128xf32>
    %36 = arith.addf %35, %34 : vector<16x128xf32>
    %37 = arith.divf %35, %36 : vector<16x128xf32>
    %38 = vector.broadcast %11 : vector<1x128xf32> to vector<16x128xf32>
    %39 = arith.mulf %37, %38 : vector<16x128xf32>
    %cst_21 = arith.constant dense<0.000000e+00> : vector<16xf32>
    %40 = vector.multi_reduction <add>, %39, %cst_21 [1] : vector<16x128xf32> to vector<16xf32>
    %41 = vector.shape_cast %40 : vector<16xf32> to vector<16x1xf32>
    %42 = vector.broadcast %13 : vector<1x1xf32> to vector<16x1xf32>
    %43 = arith.addf %41, %42 : vector<16x1xf32>
    %44 = arith.mulf %1, %43 : vector<16x1xf32>
    %45 = arith.addf %44, %2 : vector<16x1xf32>
    %cst_22 = arith.constant 0.949999988 : f32
    %46 = vector.broadcast %cst_22 : f32 to vector<16x1xf32>
    %47 = arith.divf %45, %46 : vector<16x1xf32>
    %48 = tpu.iota {dimensions = array<i32: 1>} : vector<2x16xi32>
    %49 = tpu.iota {dimensions = array<i32: 0>} : vector<2x16xi32>
    %c8_i32 = arith.constant 8 : i32
    %50 = vector.broadcast %c8_i32 : i32 to vector<2x16xi32>
    %51 = arith.muli %49, %50 : vector<2x16xi32>
    %52 = arith.cmpi sge, %48, %51 : vector<2x16xi32>
    %c1_i32 = arith.constant 1 : i32
    %53 = vector.broadcast %c1_i32 : i32 to vector<2x16xi32>
    %54 = arith.addi %49, %53 : vector<2x16xi32>
    %c8_i32_23 = arith.constant 8 : i32
    %55 = vector.broadcast %c8_i32_23 : i32 to vector<2x16xi32>
    %56 = arith.muli %54, %55 : vector<2x16xi32>
    %57 = arith.cmpi slt, %48, %56 : vector<2x16xi32>
    %58 = arith.andi %52, %57 : vector<2x16xi1>
    %59 = arith.extui %58 : vector<2x16xi1> to vector<2x16xi32>
    %60 = arith.sitofp %59 : vector<2x16xi32> to vector<2x16xf32>
    %61 = tpu.iota {dimensions = array<i32: 0>} : vector<16x2xi32>
    %62 = tpu.iota {dimensions = array<i32: 1>} : vector<16x2xi32>
    %c8_i32_24 = arith.constant 8 : i32
    %63 = vector.broadcast %c8_i32_24 : i32 to vector<16x2xi32>
    %64 = arith.muli %62, %63 : vector<16x2xi32>
    %65 = arith.cmpi sge, %61, %64 : vector<16x2xi32>
    %c1_i32_25 = arith.constant 1 : i32
    %66 = vector.broadcast %c1_i32_25 : i32 to vector<16x2xi32>
    %67 = arith.addi %62, %66 : vector<16x2xi32>
    %c8_i32_26 = arith.constant 8 : i32
    %68 = vector.broadcast %c8_i32_26 : i32 to vector<16x2xi32>
    %69 = arith.muli %67, %68 : vector<16x2xi32>
    %70 = arith.cmpi slt, %61, %69 : vector<16x2xi32>
    %71 = arith.andi %65, %70 : vector<16x2xi1>
    %72 = arith.extui %71 : vector<16x2xi1> to vector<16x2xi32>
    %73 = arith.sitofp %72 : vector<16x2xi32> to vector<16x2xf32>
    %cst_27 = arith.constant dense<0xFF800000> : vector<1xf32>
    %74 = vector.multi_reduction <maximumf>, %47, %cst_27 [0] : vector<16x1xf32> to vector<1xf32>
    %75 = vector.shape_cast %74 : vector<1xf32> to vector<1x1xf32>
    %76 = vector.broadcast %75 : vector<1x1xf32> to vector<16x1xf32>
    %77 = arith.subf %47, %76 : vector<16x1xf32>
    %78 = math.exp %77 : vector<16x1xf32>
    %cst_28 = arith.constant dense<0.000000e+00> : vector<2x1xf32>
    %79 = tpu.matmul %60, %78, %cst_28 {dimension_numbers = #tpu.dot_dimension_numbers<[1], [0], [0], [1], [0, 0, 1, 1], [], []>} : vector<2x16xf32>, vector<16x1xf32>, vector<2x1xf32> -> vector<2x1xf32>
    %cst_29 = arith.constant dense<0.000000e+00> : vector<16x1xf32>
    %80 = tpu.matmul %73, %79, %cst_29 {dimension_numbers = #tpu.dot_dimension_numbers<[1], [0], [0], [1], [0, 0, 1, 1], [], []>} : vector<16x2xf32>, vector<2x1xf32>, vector<16x1xf32> -> vector<16x1xf32>
    %81 = arith.divf %78, %80 : vector<16x1xf32>
    %82 = vector.broadcast %81 : vector<16x1xf32> to vector<16x128xf32>
    %83 = arith.mulf %82, %29 : vector<16x128xf32>
    %cst_30 = arith.constant dense<0.000000e+00> : vector<2x128xf32>
    %84 = tpu.matmul %60, %83, %cst_30 {dimension_numbers = #tpu.dot_dimension_numbers<[1], [0], [0], [1], [0, 0, 1, 1], [], []>} : vector<2x16xf32>, vector<16x128xf32>, vector<2x128xf32> -> vector<2x128xf32>
    %85 = vector.broadcast %12 : vector<1x128xf32> to vector<2x128xf32>
    %86 = arith.mulf %84, %85 : vector<2x128xf32>
    %cst_31 = arith.constant dense<0.000000e+00> : vector<2xf32>
    %87 = vector.multi_reduction <add>, %86, %cst_31 [1] : vector<2x128xf32> to vector<2xf32>
    %88 = vector.shape_cast %87 : vector<2xf32> to vector<2x1xf32>
    %89 = vector.broadcast %14 : vector<1x1xf32> to vector<2x1xf32>
    %90 = arith.addf %88, %89 : vector<2x1xf32>
    %cst_32 = arith.constant dense<0.000000e+00> : vector<16x1xf32>
    %91 = tpu.matmul %73, %90, %cst_32 {dimension_numbers = #tpu.dot_dimension_numbers<[1], [0], [0], [1], [0, 0, 1, 1], [], []>} : vector<16x2xf32>, vector<2x1xf32>, vector<16x1xf32> -> vector<16x1xf32>
    %92 = tpu.iota {dimensions = array<i32: 1>} : vector<1x128xi32>
    %c0_i32 = arith.constant 0 : i32
    %93 = vector.broadcast %c0_i32 : i32 to vector<1x128xi32>
    %94 = arith.cmpi eq, %92, %93 : vector<1x128xi32>
    %cst_33 = arith.constant 0.000000e+00 : f32
    %95 = vector.shape_cast %94 : vector<1x128xi1> to vector<1x128xi1>
    %96 = vector.broadcast %95 : vector<1x128xi1> to vector<16x128xi1>
    %97 = vector.shape_cast %81 : vector<16x1xf32> to vector<16x1xf32>
    %98 = vector.broadcast %97 : vector<16x1xf32> to vector<16x128xf32>
    %99 = vector.broadcast %cst_33 : f32 to vector<16x128xf32>
    %100 = arith.select %96, %98, %99 : vector<16x128xi1>, vector<16x128xf32>
    %c1_i32_34 = arith.constant 1 : i32
    %101 = vector.broadcast %c1_i32_34 : i32 to vector<1x128xi32>
    %102 = arith.cmpi eq, %92, %101 : vector<1x128xi32>
    %cst_35 = arith.constant 0.000000e+00 : f32
    %103 = vector.shape_cast %102 : vector<1x128xi1> to vector<1x128xi1>
    %104 = vector.broadcast %103 : vector<1x128xi1> to vector<16x128xi1>
    %105 = vector.shape_cast %91 : vector<16x1xf32> to vector<16x1xf32>
    %106 = vector.broadcast %105 : vector<16x1xf32> to vector<16x128xf32>
    %107 = vector.broadcast %cst_35 : f32 to vector<16x128xf32>
    %108 = arith.select %104, %106, %107 : vector<16x128xi1>, vector<16x128xf32>
    %109 = arith.addf %100, %108 : vector<16x128xf32>
    %c0_36 = arith.constant 0 : index
    %c0_37 = arith.constant 0 : index
    %110 = vector.load %arg3[%c0_36, %c0_37] : memref<16x128xf32, #tpu.memory_space<vmem>>, vector<16x128xf32>
    tpu.vector_store %arg3[%c0_36, %c0_37], %109 {strides = array<i32>} : memref<16x128xf32, #tpu.memory_space<vmem>>, vector<16x128xf32>,
    return
  }
  func.func @transform_0(%arg0: i32) -> (i32, i32) {
    %c0_i32 = arith.constant 0 : i32
    %c0_i32_0 = arith.constant 0 : i32
    return %arg0, %c0_i32 : i32, i32
  }
  func.func @transform_1(%arg0: i32) -> (i32, i32) {
    %c0_i32 = arith.constant 0 : i32
    %c0_i32_0 = arith.constant 0 : i32
    %c0_i32_1 = arith.constant 0 : i32
    return %c0_i32, %c0_i32_0 : i32, i32
  }
  func.func @transform_2(%arg0: i32) -> (i32, i32) {
    %c0_i32 = arith.constant 0 : i32
    %c0_i32_0 = arith.constant 0 : i32
    return %arg0, %c0_i32 : i32, i32
  }
}

</mosaic_0001>

<bundles_post_ra>
// kernel: squeeze.3
= control target key start
LH: loop header
LB: loop body
LE: loop exit
PB: predicated region body
PF: predicated region fallthrough
CT: control target
= control target key end

     0   :  { %vm7_vm0 = vcmask 64512   ;;  %s39_s0 = inlined_call_operand.vmem [shape: f32[16], index: 0, kind: input, shape index: {}]   ;;  %s40_s1 = inlined_call_operand.vmem [shape: f32[2,8], index: 1, kind: output, shape index: {}]  }
   0x1   :  { %v4_v0 = vld [vmem:[%s39_s0] sm:$0x1]  ;;  %s22_s0 = smov 120  }
   0x2   :  { %5 = vst [vmem:[#allocation1] sm:$0x1] %v4_v0 }
   0x9   :  { %v9_v1 = vld [vmem:[#allocation1] sm:$0x1]  }
   0xa   :  { %v6_v2 = vld [vmem:[#allocation1] sm:$0x1]   ;;  %10 = vrot.lane.b32.xlu0 %v9_v1, %s22_s0 }
   0xb   :  { %8 = vst.msk [vmem:[#allocation0] sm:$0x1] %vm7_vm0, %v6_v2  }
  0x7c   :  { %v11_v3 = vpop.permute.xlu0 %10  }
  0x7d   :  { %14 = vst.msk [vmem:[#allocation0 + $0x1] sm:$0x1] %vm7_vm0, %v11_v3  }
  0x84   :  { %v18_v4 = vld [vmem:[#allocation0] sm:$0x3] }
  0x85   :  { %20 = vst [vmem:[%s40_s1] sm:$0x3] %v18_v4 }

// kernel: squeeze.2
= control target key start
LH: loop header
LB: loop body
LE: loop exit
PB: predicated region body
PF: predicated region fallthrough
CT: control target
= control target key end

     0   :  { %s85_s0 = inlined_call_operand.vmem [shape: f32[16], index: 0, kind: input, shape index: {}]   ;;  %s86_s1 = inlined_call_operand.hbm [shape: f32[2,1,8], index: 1, kind: output, shape index: {}]  }
   0x1   :  { %v5_v0 = vld [vmem:[%s85_s0] sm:$0x1] }
   0x2   :  { %2 = vsyncpa [#allocation1], 0  ;;  %6 = vst [vmem:[#allocation3] sm:$0x1] %v5_v0  ;;  %vm8_vm0 = vcmask 64512   ;;  %s58_s0 = smov 120  }
   0x3   :  { %s59_s8 = smov [#allocation0]  }
   0x4   :  { %s26_s9 = sshll.u32 %s59_s8, 4  ;;  %s27_s9 = int_to_ptr.vmem [resolvable:$true] %s26_s9 }
   0x5   :  { %s34_s10 = scalar_lea.vmem %s27_s9, 32  ;;  %p39_p1 = scmp.lt.s32.totalorder %s27_s9, %s27_s9 }
   0x6   :  { %p35_p0 = scmp.ne.s32.totalorder %s27_s9, %s34_s10  ;;  %p40_p2 = scmp.lt.s32.totalorder %s34_s10, %s34_s10 }
   0x8   :  { %p41_p3 = por %p40_p2, %p39_p1 }
   0x9   :  { %v10_v1 = vld [vmem:[#allocation3] sm:$0x1]  }
   0xa   :  { %v7_v2 = vld [vmem:[#allocation3] sm:$0x1]   ;;  %11 = vrot.lane.b32.xlu0 %v10_v1, %s58_s0  ;;  %p42_p4 = pnand %p41_p3, %p35_p0 }
   0xb   :  { %9 = vst.msk [vmem:[#allocation2] sm:$0x1] %vm8_vm0, %v7_v2  }
  0x7c   :  { %v12_v3 = vpop.permute.xlu0 %11  }
  0x7d   :  { %15 = vst.msk [vmem:[#allocation2 + $0x1] sm:$0x1] %vm8_vm0, %v12_v3  }
  0x84   :  { %v19_v4 = vld [vmem:[#allocation2] sm:$0x3] }
  0x85   :  { %21 = vst [vmem:[#allocation0] sm:$0x3] %v19_v4 }
  0x86   :  { %45 = shalt.err (!%p42_p4)
}
  0x87   :  { %s46_s13 = scalar_lea.hbm %s86_s1, 32 }
  0x88   :  { %p47_p5 = scmp.ne.s32.totalorder %s86_s1, %s46_s13  ;;  %p50_p6 = scmp.lt.u32.totalorder %s46_s13, %s86_s1 }
  0x8a   :  { %p52_p7 = pnand %p50_p6, %p47_p5 }
  0x8c   :  { %55 = shalt.err (!%p52_p7)
}
  0x8d   :  { %29 = dma.vmem_to_hbm [thread:$0]  %s27_s9, 32, %s86_s1, [#allocation1]  }
  0x8e   :  { %56 = dma.done.wait [#allocation1], 32  }
  0x8f   :  { %57 = vsyncadd [#allocation1], 4294967264 }
  0x90   :  { %31 = vsyncpa [#allocation1], 1 }

// kernel: bag_attention_forward.1
= control target key start
LH: loop header
LB: loop body
LE: loop exit
PB: predicated region body
PF: predicated region fallthrough
CT: control target
= control target key end

     0   :  { %7 = vsyncpa [#allocation3], 0  ;;  %s1358_s9 = smov [#allocation2]   ;;  %s1457_s0 = inlined_call_operand.vmem [shape: f32[16,128], index: 0, kind: input, shape index: {}]   ;;  %s1458_s1 = inlined_call_operand.hbm [shape: f32[520,128], index: 1, kind: input, shape index: {}]   ;;  %s1459_s2 = inlined_call_operand.vmem [shape: f32[16,128], index: 2, kind: output, shape index: {}]  }
   0x1   :  { %s15_s10 = sshll.u32 %s1358_s9, 4  ;;  %s1334_s13 = scalar_lea.hbm %s1458_s1, 8320  ;;  %s16_s10 = int_to_ptr.vmem [resolvable:$true] %s15_s10 }
   0x2   :  { %p1335_p0 = scmp.ne.s32.totalorder %s1458_s1, %s1334_s13  ;;  %p1338_p1 = scmp.lt.u32.totalorder %s1334_s13, %s1458_s1 }
   0x4   :  { %p1340_p2 = pnand %p1338_p1, %p1335_p0 }
   0x6   :  { %1343 = shalt.err (!%p1340_p2)
}
   0x7   :  { %s1344_s18 = scalar_lea.vmem %s16_s10, 8320  ;;  %p1349_p4 = scmp.lt.s32.totalorder %s16_s10, %s16_s10 }
   0x8   :  { %p1345_p3 = scmp.ne.s32.totalorder %s16_s10, %s1344_s18  ;;  %p1350_p5 = scmp.lt.s32.totalorder %s1344_s18, %s1344_s18 }
   0xa   :  { %p1351_p6 = por %p1350_p5, %p1349_p4 }
   0xc   :  { %p1352_p7 = pnand %p1351_p6, %p1345_p3 }
   0xe   :  { %1355 = shalt.err (!%p1352_p7)
}
   0xf   :  { %s1359_s19 = smov 128   ;;  %s1360_s20 = smov 8  }
  0x10   :  { %21 = dma.hbm_to_vmem [thread:$0]  %s1458_s1, 8320, %s16_s10, [#allocation3], %s1359_s19, %s1359_s19, %s1360_s20  }
  0x11   :  { %1356 = dma.done.wait [#allocation3], 8320  }
  0x12   :  { %1357 = vsyncadd [#allocation3], 4294958976  ;;  %v27_v0 = vld [vmem:[#allocation2] sm:$0xff]  ;;  %v28_v1 = vld [vmem:[#allocation2 + $0x8] sm:$0xff]  ;;  %s1362_s26 = smov 32   ;;  %vm498_vm0 = vcmask 269568  }
  0x13   :  { %v29_v2 = vld [vmem:[#allocation2 + $0x10] sm:$0xff]  ;;  %v1165_v3 = vpack.c.bf16 %v28_v1, %v27_v0  ;;  %v30_v4 = vld [vmem:[#allocation2 + $0x18] sm:$0xff]  ;;  %v31_v6 = vld [vmem:[#allocation2 + $0x20] sm:$0xff]  ;;  %vm1364_vm1 = vmmov 0   ;;  %s1366_s27 = smov 96   ;;  %vm522_vm5 = vcmask 130048  }
  0x14   :  { %v1169_v5 = vpack.c.bf16 %v30_v4, %v29_v2  ;;  %v32_v7 = vld [vmem:[#allocation2 + $0x28] sm:$0xff]  ;;  %v33_v9 = vld [vmem:[#allocation2 + $0x30] sm:$0xff]  ;;  %v34_v10 = vld [vmem:[#allocation2 + $0x38] sm:$0xff]  ;;  %vm596_vm11 = vcmask 15360   ;;  %vm603_vm13 = vcmask 1041408  }
  0x15   :  { %1166 = vmatprep.subr.bf16.mxu0 %v1165_v3  ;;  %v1173_v8 = vpack.c.bf16 %v32_v7, %v31_v6  ;;  %v1399_v11 = vld [vmem:[%s1457_s0] sm:$0xff]  ;;  %v44_v13 = vld [vmem:[#allocation2 + $0x88] sm:$0xff]  ;;  %v45_v14 = vld [vmem:[#allocation2 + $0x90] sm:$0xff]  ;;  %v1177_v20 = vpack.c.bf16 %v34_v10, %v33_v9 }
  0x16   :  { %1168 = vmatpush3.bf16.msra.mxu0 %v1165_v3  ;;  %1033 = vmatprep.mubr.f32.mxu0 %v1399_v11  ;;  %v43_v12 = vld [vmem:[#allocation2 + $0x80] sm:$0xff]  ;;  %v46_v16 = vld [vmem:[#allocation2 + $0x98] sm:$0xff]  ;;  %v48_v19 = vld [vmem:[#allocation2 + $0xa8] sm:$0xff] }
  0x17   :  { %1170 = vmatprep.subr.bf16.mxu0 %v1169_v5  ;;  %v1197_v15 = vpack.c.bf16 %v44_v13, %v43_v12  ;;  %v1201_v17 = vpack.c.bf16 %v46_v16, %v45_v14  ;;  %v47_v18 = vld [vmem:[#allocation2 + $0xa0] sm:$0xff]  ;;  %v36_v22 = vld [vmem:[#allocation2 + $0x48] sm:$0xff]  ;;  %v49_v24 = vld [vmem:[#allocation2 + $0xb0] sm:$0xff] }
  0x18   :  { %v35_v21 = vld [vmem:[#allocation2 + $0x40] sm:$0xff]  ;;  %v1205_v23 = vpack.c.bf16 %v48_v19, %v47_v18  ;;  %v50_v25 = vld [vmem:[#allocation2 + $0xb8] sm:$0xff]  ;;  %v37_v27 = vld [vmem:[#allocation2 + $0x50] sm:$0xff] }
  0x19   :  { %1198 = vmatprep.subr.bf16.mxu1 %v1197_v15  ;;  %v1181_v26 = vpack.c.bf16 %v36_v22, %v35_v21  ;;  %v38_v28 = vld [vmem:[#allocation2 + $0x58] sm:$0xff]  ;;  %v1209_v29 = vpack.c.bf16 %v50_v25, %v49_v24  ;;  %v51_v30 = vld [vmem:[#allocation2 + $0xc0] sm:$0xff]  ;;  %v52_v31 = vld [vmem:[#allocation2 + $0xc8] sm:$0xff] }
  0x1a   :  { %1172 = vmatpush3.bf16.msra.mxu0 %v1169_v5  ;;  %1200 = vmatpush3.bf16.msra.mxu1 %v1197_v15  ;;  %v1185_v32 = vpack.c.bf16 %v38_v28, %v37_v27  ;;  %v39_v33 = vld [vmem:[#allocation2 + $0x60] sm:$0xff]  ;;  %v40_v34 = vld [vmem:[#allocation2 + $0x68] sm:$0xff]  ;;  %v1213_v35 = vpack.c.bf16 %v52_v31, %v51_v30  ;;  %v53_v36 = vld [vmem:[#allocation2 + $0xd0] sm:$0xff] }
  0x1b   :  { %1174 = vmatprep.subr.bf16.mxu0 %v1173_v8  ;;  %1202 = vmatprep.subr.bf16.mxu1 %v1201_v17  ;;  %v54_v37 = vld [vmem:[#allocation2 + $0xd8] sm:$0xff]  ;;  %v1189_v38 = vpack.c.bf16 %v40_v34, %v39_v33  ;;  %v41_v39 = vld [vmem:[#allocation2 + $0x70] sm:$0xff]  ;;  %v55_v42 = vld [vmem:[#allocation2 + $0xe0] sm:$0xff] }
  0x1c   :  { %v42_v40 = vld [vmem:[#allocation2 + $0x78] sm:$0xff]  ;;  %v1217_v41 = vpack.c.bf16 %v54_v37, %v53_v36  ;;  %v56_v43 = vld [vmem:[#allocation2 + $0xe8] sm:$0xff]  ;;  %v57_v47 = vld [vmem:[#allocation2 + $0xf0] sm:$0xff] }
  0x1d   :  { %v1193_v44 = vpack.c.bf16 %v42_v40, %v41_v39  ;;  %v1221_v45 = vpack.c.bf16 %v56_v43, %v55_v42  ;;  %v1405_v46 = vld [vmem:[%s1457_s0 + $0x8] sm:$0xff]  ;;  %v58_v48 = vld [vmem:[#allocation2 + $0xf8] sm:$0xff]  ;;  %v59_v50 = vld [vmem:[#allocation2 + $0x100] sm:$0xff]  ;;  %s1361_s0 = smov 127  }
  0x1e   :  { %1176 = vmatpush3.bf16.msra.mxu0 %v1173_v8  ;;  %1204 = vmatpush3.bf16.msra.mxu1 %v1201_v17  ;;  %v1225_v49 = vpack.c.bf16 %v58_v48, %v57_v47  ;;  %v60_v51 = vld [vmem:[#allocation2 + $0x108] sm:$0xff]  ;;  %v61_v52 = vld [vmem:[#allocation2 + $0x110] sm:$0xff]  ;;  %v62_v54 = vld [vmem:[#allocation2 + $0x118] sm:$0xff] }
  0x1f   :  { %1178 = vmatprep.subr.bf16.mxu0 %v1177_v20  ;;  %1206 = vmatprep.subr.bf16.mxu1 %v1205_v23  ;;  %v1229_v53 = vpack.c.bf16 %v60_v51, %v59_v50  ;;  %v1233_v55 = vpack.c.bf16 %v62_v54, %v61_v52  ;;  %v63_v56 = vld [vmem:[#allocation2 + $0x120] sm:$0xff]  ;;  %v64_v57 = vld [vmem:[#allocation2 + $0x128] sm:$0xff]  ;;  %v65_v59 = vld [vmem:[#allocation2 + $0x130] sm:$0xff] }
  0x20   :  { %v1237_v58 = vpack.c.bf16 %v64_v57, %v63_v56  ;;  %v66_v60 = vld [vmem:[#allocation2 + $0x138] sm:$0xff]  ;;  %v67_v62 = vld [vmem:[#allocation2 + $0x140] sm:$0xff]  ;;  %v68_v63 = vld [vmem:[#allocation2 + $0x148] sm:$0xff] }
  0x21   :  { %v1241_v61 = vpack.c.bf16 %v66_v60, %v65_v59  ;;  %v1245_v0 = vpack.c.bf16 %v68_v63, %v67_v62  ;;  %v69_v1 = vld [vmem:[#allocation2 + $0x150] sm:$0xff]  ;;  %v70_v2 = vld [vmem:[#allocation2 + $0x158] sm:$0xff]  ;;  %v71_v4 = vld [vmem:[#allocation2 + $0x160] sm:$0xff] }
  0x22   :  { %1180 = vmatpush3.bf16.msra.mxu0 %v1177_v20  ;;  %1208 = vmatpush3.bf16.msra.mxu1 %v1205_v23  ;;  %v1249_v3 = vpack.c.bf16 %v70_v2, %v69_v1  ;;  %v72_v5 = vld [vmem:[#allocation2 + $0x168] sm:$0xff]  ;;  %v896_v7 = vld [vmem:[#allocation2 + $0x200] ss:$0 sm:$0xff]  ;;  %v73_v15 = vld [vmem:[#allocation2 + $0x170] sm:$0xff] }
  0x23   :  { %1182 = vmatprep.subr.bf16.mxu0 %v1181_v26  ;;  %1210 = vmatprep.subr.bf16.mxu1 %v1209_v29  ;;  %v1253_v6 = vpack.c.bf16 %v72_v5, %v71_v4  ;;  %v74_v16 = vld [vmem:[#allocation2 + $0x178] sm:$0xff]  ;;  %v75_v18 = vld [vmem:[#allocation2 + $0x180] sm:$0xff]  ;;  %v76_v19 = vld [vmem:[#allocation2 + $0x188] sm:$0xff] }
  0x24   :  { %v1257_v17 = vpack.c.bf16 %v74_v16, %v73_v15  ;;  %v77_v20 = vld [vmem:[#allocation2 + $0x190] sm:$0xff]  ;;  %v1261_v21 = vpack.c.bf16 %v76_v19, %v75_v18  ;;  %v78_v22 = vld [vmem:[#allocation2 + $0x198] sm:$0xff]  ;;  %v79_v24 = vld [vmem:[#allocation2 + $0x1a0] sm:$0xff] }
  0x25   :  { %v1265_v23 = vpack.c.bf16 %v78_v22, %v77_v20  ;;  %v80_v25 = vld [vmem:[#allocation2 + $0x1a8] sm:$0xff]  ;;  %v81_v27 = vld [vmem:[#allocation2 + $0x1b0] sm:$0xff]  ;;  %v82_v28 = vld [vmem:[#allocation2 + $0x1b8] sm:$0xff] }
  0x26   :  { %1184 = vmatpush3.bf16.msra.mxu0 %v1181_v26  ;;  %1212 = vmatpush3.bf16.msra.mxu1 %v1209_v29  ;;  %v1269_v26 = vpack.c.bf16 %v80_v25, %v79_v24  ;;  %v1273_v29 = vpack.c.bf16 %v82_v28, %v81_v27  ;;  %v83_v30 = vld [vmem:[#allocation2 + $0x1c0] sm:$0xff]  ;;  %v84_v31 = vld [vmem:[#allocation2 + $0x1c8] sm:$0xff]  ;;  %v85_v33 = vld [vmem:[#allocation2 + $0x1d0] sm:$0xff] }
  0x27   :  { %1186 = vmatprep.subr.bf16.mxu0 %v1185_v32  ;;  %1214 = vmatprep.subr.bf16.mxu1 %v1213_v35  ;;  %v86_v34 = vld [vmem:[#allocation2 + $0x1d8] sm:$0xff]  ;;  %v87_v36 = vld [vmem:[#allocation2 + $0x1e0] sm:$0xff]  ;;  %v88_v37 = vld [vmem:[#allocation2 + $0x1e8] sm:$0xff] }
  0x28   :  { %v897_v39 = vld [vmem:[#allocation2 + $0x201] ss:$0 sm:$0xff]  ;;  %v89_v47 = vld [vmem:[#allocation2 + $0x1f0] sm:$0xff]  ;;  %v90_v48 = vld [vmem:[#allocation2 + $0x1f8] sm:$0xff] }
  0x29   :  { %v898_v50 = vld [vmem:[#allocation2 + $0x202] ss:$0 sm:$0xff]  ;;  %v899_v57 = vld [vmem:[#allocation2 + $0x203] ss:$0 sm:$0xff]  ;;  %v902_v4 = vld [vmem:[#allocation2 + $0x204] ss:$0 sm:$0xff] }
  0x2a   :  { %1188 = vmatpush3.bf16.msra.mxu0 %v1185_v32  ;;  %1216 = vmatpush3.bf16.msra.mxu1 %v1213_v35  ;;  %v1277_v32 = vpack.c.bf16 %v84_v31, %v83_v30  ;;  %v1281_v35 = vpack.c.bf16 %v86_v34, %v85_v33 }
  0x2b   :  { %1190 = vmatprep.subr.bf16.mxu0 %v1189_v38  ;;  %1218 = vmatprep.subr.bf16.mxu1 %v1217_v41 }
  0x2e   :  { %1192 = vmatpush3.bf16.msra.mxu0 %v1189_v38  ;;  %1220 = vmatpush3.bf16.msra.mxu1 %v1217_v41  ;;  %v1285_v38 = vpack.c.bf16 %v88_v37, %v87_v36  ;;  %v1365_v37 = vmov 0.0  }
  0x2f   :  { %1194 = vmatprep.subr.bf16.mxu0 %v1193_v44  ;;  %1222 = vmatprep.subr.bf16.mxu1 %v1221_v45 }
  0x32   :  { %1196 = vmatpush3.bf16.msra.mxu0 %v1193_v44  ;;  %1224 = vmatpush3.bf16.msra.mxu1 %v1221_v45 }
  0x33   :  { %1226 = vmatprep.subr.bf16.mxu1 %v1225_v49  ;;  %1230 = vmatprep.subr.bf16.mxu0 %v1229_v53 }
  0x35   :  { %1034 = vmatmul.mubr.f32.vlgmr.msra.gmra.mrb[0].mxu0 %v1405_v46 }
  0x36   :  { %1228 = vmatpush3.bf16.msra.mxu1 %v1225_v49  ;;  %1232 = vmatpush3.bf16.msra.mxu0 %v1229_v53  ;;  %v1289_v49 = vpack.c.bf16 %v90_v48, %v89_v47 }
  0x37   :  { %1234 = vmatprep.subr.bf16.mxu0 %v1233_v55  ;;  %1262 = vmatprep.subr.bf16.mxu1 %v1261_v21 }
  0x3a   :  { %1236 = vmatpush3.bf16.msra.mxu0 %v1233_v55 }
  0x3b   :  { %1238 = vmatprep.subr.bf16.mxu0 %v1237_v58 }
  0x3e   :  { %1240 = vmatpush3.bf16.msra.mxu0 %v1237_v58 }
  0x3f   :  { %1242 = vmatprep.subr.bf16.mxu0 %v1241_v61 }
  0x42   :  { %1244 = vmatpush3.bf16.msra.mxu0 %v1241_v61 }
  0x43   :  { %1246 = vmatprep.subr.bf16.mxu0 %v1245_v0 }
  0x46   :  { %1248 = vmatpush3.bf16.msra.mxu0 %v1245_v0 }
  0x47   :  { %1250 = vmatprep.subr.bf16.mxu0 %v1249_v3 }
  0x4a   :  { %1252 = vmatpush3.bf16.msra.mxu0 %v1249_v3 }
  0x4b   :  { %1254 = vmatprep.subr.bf16.mxu0 %v1253_v6 }
  0x4e   :  { %1256 = vmatpush3.bf16.msra.mxu0 %v1253_v6 }
  0x4f   :  { %1258 = vmatprep.subr.bf16.mxu0 %v1257_v17 }
  0x52   :  { %1260 = vmatpush3.bf16.msra.mxu0 %v1257_v17 }
 0x108   :  { %v1035_v8 = vpop.f32.mrb[0].mxu0 }
 0x109   :  { %v175_v9 = vadd.f32 %v1035_v8, %v896_v7  ;;  %v169_v10 = vpop.f32.mrb[1].mxu0 }
 0x10a   :  { %v170_v12 = vadd.f32 %v896_v7, %v169_v10  ;;  %v903_v10 = vld [vmem:[#allocation2 + $0x206] ss:$0 sm:$0xff] }
 0x10b   :  { %v179_v14 = vmax.f32 %v175_v9, 0.0 }
 0x10c   :  { %v178_v13 = vmax.f32 %v170_v12, 0.0 }
 0x10e   :  { %1068 = vmatprep.mubr.f32.mxu1 %v178_v13 }
 0x10f   :  { %1069 = vmatmul.mubr.f32.vlgmr.msra.gmra.mrb[0].mxu1 %v179_v14 }
 0x110   :  { %1264 = vmatpush3.bf16.msra.mxu1 %v1261_v21 }
 0x111   :  { %1266 = vmatprep.subr.bf16.mxu1 %v1265_v23 }
 0x114   :  { %1268 = vmatpush3.bf16.msra.mxu1 %v1265_v23 }
 0x115   :  { %1270 = vmatprep.subr.bf16.mxu1 %v1269_v26 }
 0x118   :  { %1272 = vmatpush3.bf16.msra.mxu1 %v1269_v26 }
 0x119   :  { %1274 = vmatprep.subr.bf16.mxu1 %v1273_v29 }
 0x11c   :  { %1276 = vmatpush3.bf16.msra.mxu1 %v1273_v29 }
 0x11d   :  { %1278 = vmatprep.subr.bf16.mxu1 %v1277_v32 }
 0x120   :  { %1280 = vmatpush3.bf16.msra.mxu1 %v1277_v32 }
 0x121   :  { %1282 = vmatprep.subr.bf16.mxu1 %v1281_v35 }
 0x124   :  { %1284 = vmatpush3.bf16.msra.mxu1 %v1281_v35 }
 0x125   :  { %1286 = vmatprep.subr.bf16.mxu1 %v1285_v38 }
 0x128   :  { %1288 = vmatpush3.bf16.msra.mxu1 %v1285_v38 }
 0x129   :  { %1290 = vmatprep.subr.bf16.mxu1 %v1289_v49 }
 0x12c   :  { %1292 = vmatpush3.bf16.msra.mxu1 %v1289_v49 }
 0x1e2   :  { %v1070_v40 = vpop.f32.mrb[0].mxu1 }
 0x1e3   :  { %v256_v41 = vadd.f32 %v1070_v40, %v897_v39  ;;  %v250_v42 = vpop.f32.mrb[1].mxu1 }
 0x1e4   :  { %v251_v43 = vadd.f32 %v897_v39, %v250_v42 }
 0x1e5   :  { %v260_v45 = vmax.f32 %v256_v41, 0.0  ;;  %v472_v41 = vlaneseq }
 0x1e6   :  { %v259_v44 = vmax.f32 %v251_v43, 0.0 }
 0x1e7   :  { %v475_v42 = vshrl.u32 %v472_v41, 7 }
 0x1e8   :  { %1103 = vmatprep.mubr.f32.mxu0 %v259_v44  ;;  %v1425_v44 = vand.u32 127, %v472_v41 }
 0x1e9   :  { %1104 = vmatmul.mubr.f32.vlgmr.msra.gmra.mrb[2].mxu0 %v260_v45  ;;  %v478_v43 = vadd.s32 1, %v475_v42  ;;  %v476_v45 = vmul.u32 8, %v475_v42 }
 0x1ea   :  { %1145 = vmatprep.mubr.msk.f32.mxu0 %vm1364_vm1, %v1365_v37  ;;  %vm867_vm14 = vcmp.eq.s32.totalorder %v1425_v44, 0  ;;  %vm872_vm15 = vcmp.eq.s32.totalorder %v1425_v44, 1 }
 0x1eb   :  { %v479_v47 = vmul.u32 8, %v478_v43  ;;  %vm477_vm2 = vcmp.ge.s32.totalorder %v1425_v44, %v476_v45 }
 0x1ed   :  { %vm480_vm3 = vcmp.lt.s32.totalorder %v1425_v44, %v479_v47 }
 0x1ee   :  { %vm481_vm4 = vmand %vm477_vm2, %vm480_vm3 }
 0x2bc   :  { %v1105_v51 = vpop.f32.mrb[2].mxu0 }
 0x2bd   :  { %v1408_v52 = vadd.f32 %v1105_v51, %v898_v50  ;;  %v331_v53 = vpop.f32.mrb[3].mxu0 }
 0x2be   :  { %v1410_v54 = vadd.f32 %v898_v50, %v331_v53  ;;  %v904_v53 = vsel %vm481_vm4, 1.0, %v1365_v37 }
 0x2bf   :  { %v341_v56 = vmax.f32 %v1408_v52, 0.0  ;;  %v1368_v52 = vmov 0  }
 0x2c0   :  { %v340_v55 = vmax.f32 %v1410_v54, 0.0  ;;  %1317 = vset.pattern.permute.xlu0 %v1368_v52 }
 0x2c2   :  { %1138 = vmatprep.mubr.f32.mxu1 %v340_v55 }
 0x2c3   :  { %1139 = vmatmul.mubr.f32.vlgmr.msra.gmra.mrb[2].mxu1 %v341_v56 }
 0x396   :  { %v1140_v58 = vpop.f32.mrb[2].mxu1 }
 0x397   :  { %v418_v59 = vadd.f32 %v1140_v58, %v899_v57  ;;  %v412_v60 = vpop.f32.mrb[3].mxu1  ;;  %v485_v58 = vmul.u32 8, %v1425_v44 }
 0x398   :  { %v413_v61 = vadd.f32 %v899_v57, %v412_v60  ;;  %v488_v57 = vadd.s32 1, %v1425_v44  ;;  %v484_v60 = vadd.s32 8, %v475_v42 }
 0x399   :  { %v901_v62 = vmul.f32 -1.442695, %v418_v59  ;;  %vm486_vm6 = vcmp.ge.s32.totalorder %v475_v42, %v485_v58 }
 0x39a   :  { %v900_v63 = vmul.f32 -1.442695, %v413_v61  ;;  %v489_v59 = vmul.u32 8, %v488_v57  ;;  %vm487_vm9 = vcmp.ge.s32.totalorder %v484_v60, %v485_v58 }
 0x39b   :  { %1318 = vpow2.f32 %v901_v62 }
 0x39c   :  { %1320 = vpow2.f32 %v900_v63  ;;  %vm490_vm7 = vcmp.lt.s32.totalorder %v475_v42, %v489_v59  ;;  %vm491_vm10 = vcmp.lt.s32.totalorder %v484_v60, %v489_v59 }
 0x39d   :  { %vm492_vm8 = vmand %vm486_vm6, %vm490_vm7 }
 0x39e   :  { %v905_v61 = vsel %vm492_vm8, 1.0, %v1365_v37  ;;  %vm493_vm12 = vmand %vm487_vm9, %vm491_vm10 }
 0x39f   :  { %1150 = vmatprep.mubr.msk.f32.mxu1 %vm596_vm11, %v905_v61  ;;  %v906_v63 = vsel %vm493_vm12, 1.0, %v1365_v37 }
 0x3a5   :  { %v1319_v0 = vpop.eup %1318 }
 0x3a6   :  { %v1321_v1 = vpop.eup %1320  ;;  %v428_v2 = vadd.f32 1.0, %v1319_v0 }
 0x3a7   :  { %v427_v3 = vadd.f32 1.0, %v1321_v1  ;;  %v1367_v1 = vmov 32  }
 0x3a8   :  { %1315 = vset.pattern.permute.xlu1 %v1367_v1 }
 0x3a9   :  { %1322 = vrcp.f32 %v427_v3 }
 0x3aa   :  { %1324 = vrcp.f32 %v428_v2 }
 0x3b3   :  { %v1323_v5 = vpop.eup %1322 }
 0x3b4   :  { %v437_v6 = vmul.f32 %v1323_v5, %v902_v4  ;;  %v1325_v7 = vpop.eup %1324 }
 0x3b5   :  { %v438_v8 = vmul.f32 %v1325_v7, %v902_v4 }
 0x3b6   :  { %439 = vadd.xlane.f32.xlu0 %v437_v6 }
 0x3ba   :  { %441 = vadd.xlane.f32.xlu0 %v438_v8 }
 0x3d0   :  { %461 = vrot.lane.b32.xlu0 %v1399_v11, %s1361_s0 }
 0x443   :  { %v440_v9 = vpop.xlane.xlu0 %439 }
 0x444   :  { %v447_v14 = vadd.f32 %v903_v10, %v440_v9 }
 0x447   :  { %v442_v12 = vpop.xlane.xlu0 %441 }
 0x448   :  { %v448_v13 = vadd.f32 %v903_v10, %v442_v12 }
 0x44a   :  { %453 = vrot.lane.b32.xlu1 %v448_v13, %s1362_s26 }
 0x44b   :  { %v462_v17 = vpop.permute.xlu0 %461 }
 0x44e   :  { %451 = vrot.lane.b32.xlu1 %v447_v14, %s1362_s26 }
 0x452   :  { %463 = vrot.lane.b32.xlu1 %v1405_v46, %s1361_s0 }
 0x4bc   :  { %v454_v15 = vpop.permute.xlu1 %453 }
 0x4bd   :  { %v458_v19 = vmul.f32 %v454_v15, %v1405_v46  ;;  %v1363_v46 = vmov 0.0|0.0  }
 0x4be   :  { %1293 = vmatprep.subr.bf16.mxu0 %v1363_v46 }
 0x4c0   :  { %v452_v16 = vpop.permute.xlu1 %451 }
 0x4c1   :  { %v457_v18 = vmul.f32 %v452_v16, %v1399_v11  ;;  %v912_v16 = vld [vmem:[#allocation2 + $0x205] ss:$0 sm:$0xff] }
 0x4c3   :  { %v467_v20 = vadd.f32 %v462_v17, %v457_v18 }
 0x4c4   :  { %v464_v21 = vpop.permute.xlu1 %463 }
 0x4c5   :  { %v470_v22 = vmul.f32 1.0526316, %v467_v20  ;;  %v468_v23 = vadd.f32 %v464_v21, %v458_v19  ;;  %v913_v21 = vld [vmem:[#allocation2 + $0x207] ss:$0 sm:$0xff] }
 0x4c7   :  { %v471_v24 = vmul.f32 1.0526316, %v468_v23  ;;  %v499_v25 = vsel %vm498_vm0, %v470_v22, -inf }
 0x4c9   :  { %v500_v26 = vsel %vm498_vm0, %v471_v24, -inf }
 0x4ca   :  { %v501_v27 = vmax.f32 %v499_v25, %v500_v26 }
 0x4cc   :  { %v502_v28 = vrot.slane %v501_v27, 4 }
 0x4ce   :  { %v503_v29 = vmax.f32 %v501_v27, %v502_v28 }
 0x4d0   :  { %v504_v30 = vrot.slane %v503_v29, 2 }
 0x4d2   :  { %v505_v31 = vmax.f32 %v503_v29, %v504_v30 }
 0x4d4   :  { %v506_v32 = vrot.slane %v505_v31, 1 }
 0x4d6   :  { %v507_v33 = vmax.f32 %v505_v31, %v506_v32 }
 0x4d8   :  { %v508_v34 = vsub.f32 %v470_v22, %v507_v33  ;;  %v509_v35 = vsub.f32 %v471_v24, %v507_v33 }
 0x4da   :  { %v510_v11 = vmul.f32 1.442695, %v508_v34  ;;  %v512_v36 = vmul.f32 1.442695, %v509_v35 }
 0x4dc   :  { %1326 = vpow2.f32 %v510_v11 }
 0x4dd   :  { %1328 = vpow2.f32 %v512_v36 }
 0x4e6   :  { %v1327_v38 = vpop.eup %1326 }
 0x4e7   :  { %v1329_v39 = vpop.eup %1328 }
 0x4e8   :  { %v1310_v40 = vpack.i.bf16 %v1329_v39, %v1327_v38 }
 0x4ea   :  { %1311 = vrot.lane.b32.xlu1 %v1310_v40, %s1366_s27 }
 0x55c   :  { %v1312_v48 = vpop.permute.xlu1 %1311 }
 0x55d   :  { %v1314_v49 = vunpack.i.h.bf16 %v1312_v48  ;;  %v1313_v50 = vunpack.i.l.bf16 %v1312_v48 }
 0x55f   :  { %v1294_v51 = vpack.c.bf16 %v1314_v49, %v1313_v50 }
 0x561   :  { %1295 = vmatpush3.bf16.msra.mxu0 %v1294_v51 }
 0x562   :  { %1296 = vmatprep.subr.bf16.mxu0 %v1363_v46 }
 0x564   :  { %1146 = vmatmul.mubr.msk.f32.vlgmr.msra.gmra.mrb[4].mxu0 %vm522_vm5, %v904_v53 }
 0x565   :  { %1157 = vmatprep.mubr.msk.f32.mxu0 %vm1364_vm1, %v1365_v37 }
 0x637   :  { %v592_v62 = vpop.f32.mrb[4].mxu0 }
 0x638   :  { %v1147_v0 = vpop.f32.mrb[5].mxu0  ;;  %1148 = vmatprep.subr.msk.mxu1 %vm603_vm13, %v592_v62 }
 0x639   :  { %1149 = vmatpush3.msk.msra.mxu1 %vm603_vm13, %v592_v62 }
 0x63a   :  { %1151 = vmatmul.mubr.msk.f32.vlgmr.msra.gmra.mrb[4].mxu1 %vm596_vm11, %v906_v63 }
 0x63b   :  { %1162 = vmatprep.mubr.msk.f32.mxu1 %vm596_vm11, %v905_v61 }
 0x70d   :  { %v1152_v2 = vpop.f32.mrb[4].mxu1 }
 0x70e   :  { %v673_v3 = vpop.f32.mrb[5].mxu1 }
 0x70f   :  { %684 = vrot.lane.b32.xlu1 %v673_v3, %s1362_s26 }
 0x713   :  { %686 = vrot.lane.b32.xlu1 %v1152_v2, %s1362_s26 }
 0x781   :  { %v685_v4 = vpop.permute.xlu1 %684 }
 0x782   :  { %1330 = vrcp.f32 %v685_v4 }
 0x785   :  { %v687_v5 = vpop.permute.xlu1 %686 }
 0x786   :  { %1332 = vrcp.f32 %v687_v5 }
 0x78c   :  { %v1331_v6 = vpop.eup %1330 }
 0x78d   :  { %v691_v7 = vmul.f32 %v1331_v6, %v1327_v38 }
 0x78f   :  { %696 = vperm.xlu1 %1315, %v691_v7  }
 0x790   :  { %v1333_v8 = vpop.eup %1332 }
 0x791   :  { %v693_v9 = vmul.f32 %v1333_v8, %v1329_v39 }
 0x793   :  { %701 = vperm.xlu1 %1315, %v693_v9  }
 0x797   :  { %1316 = vset.pattern.permute.xlu1 %v1368_v52 }
 0x80e   :  { %v697_v10 = vpop.permute.xlu1 %696 }
 0x80f   :  { %v704_v13 = vmul.f32 %v697_v10, %v340_v55  ;;  %v870_v24 = vsel %vm867_vm14, %v697_v10, 0.0 }
 0x812   :  { %v702_v12 = vpop.permute.xlu1 %701 }
 0x813   :  { %v705_v14 = vmul.f32 %v702_v12, %v341_v56  ;;  %v871_v28 = vsel %vm867_vm14, %v702_v12, 0.0 }
 0x815   :  { %v1297_v15 = vpack.c.bf16 %v705_v14, %v704_v13 }
 0x817   :  { %1298 = vmatpush3.bf16.msra.mxu0 %v1297_v15 }
 0x81a   :  { %1158 = vmatmul.mubr.msk.f32.vlgmr.msra.gmra.mrb[6].mxu0 %vm522_vm5, %v904_v53 }
 0x8ed   :  { %v772_v17 = vpop.f32.mrb[6].mxu0 }
 0x8ee   :  { %v780_v18 = vmul.f32 %v912_v16, %v772_v17  ;;  %v1159_v19 = vpop.f32.mrb[7].mxu0 }
 0x8f0   :  { %v781_v20 = vsel %vm603_vm13, %v780_v18, 0.0 }
 0x8f1   :  { %782 = vadd.xlane.f32.xlu0 %v781_v20 }
 0x97e   :  { %v783_v22 = vpop.xlane.xlu0 %782 }
 0x97f   :  { %v788_v23 = vadd.f32 %v913_v21, %v783_v22 }
 0x981   :  { %1160 = vmatprep.subr.msk.mxu1 %vm603_vm13, %v788_v23 }
 0x982   :  { %1161 = vmatpush3.msk.msra.mxu1 %vm603_vm13, %v788_v23 }
 0x983   :  { %1163 = vmatmul.mubr.msk.f32.vlgmr.msra.gmra.mrb[6].mxu1 %vm596_vm11, %v906_v63 }
 0xa56   :  { %v1164_v54 = vpop.f32.mrb[6].mxu1 }
 0xa57   :  { %v858_v55 = vpop.f32.mrb[7].mxu1 }
 0xa58   :  { %877 = vperm.xlu1 %1316, %v858_v55  }
 0xa5c   :  { %882 = vperm.xlu1 %1316, %v1164_v54  }
 0xad7   :  { %v878_v56 = vpop.permute.xlu1 %877 }
 0xad8   :  { %v885_v25 = vsel %vm872_vm15, %v878_v56, 0.0 }
 0xad9   :  { %v887_v26 = vadd.f32 %v885_v25, %v870_v24 }
 0xadb   :  { %889 = vst [vmem:[%s1459_s2] sm:$0xff] %v887_v26  ;;  %v883_v27 = vpop.permute.xlu1 %882 }
 0xadc   :  { %v886_v29 = vsel %vm872_vm15, %v883_v27, 0.0 }
 0xadd   :  { %v888_v30 = vadd.f32 %v886_v29, %v871_v28 }
 0xadf   :  { %890 = vst [vmem:[%s1459_s2 + $0x8] sm:$0xff] %v888_v30 }
 0xae0   :  { %895 = vsyncpa [#allocation3], 1 }

</bundles_post_ra>
